<compile_context>
chip_gen: v5e
topology: v5e:2x2
jax: 0.10.0
libtpu: 0.0.40
codegen_flags: <defaults>
</compile_context>

<pallas_src>
import jax
import jax.numpy as jnp
from jax import lax
from jax.experimental import pallas as pl
from jax.experimental.pallas import tpu as pltpu


def _linear_activations_kernel(x_ref, w_ref, b_ref, out_ref):
    # v1 = x @ W + b   (W already (in_f, out_f): canonical MXU contraction)
    v1 = lax.dot_general(
        x_ref[...], w_ref[...],
        dimension_numbers=(((1,), (0,)), ((), ())),
        preferred_element_type=jnp.float32,
        precision=lax.Precision.HIGHEST,
    ) + b_ref[...]

    out_f = v1.shape[-1]

    # torch.relu
    relu = jnp.maximum(v1, 0.0)

    # One tanh push over [0.5*v1 | v1] yields both sigmoid and tanh
    # (doubles EUP lane occupancy vs two separate 16-lane pushes).
    t = jnp.tanh(jnp.concatenate([0.5 * v1, v1], axis=-1))
    sig = 0.5 * (t[:, :out_f] + 1.0)      # torch.sigmoid
    tnh = t[:, out_f:]                    # torch.tanh

    # torch.softmax over the feature dim (max-subtracted, exact divide).
    m = jnp.max(v1, axis=-1, keepdims=True)
    e = jnp.exp(v1 - m)
    smx = e / jnp.sum(e, axis=-1, keepdims=True)

    # Packed store of the four distinct activations: (TILE_B, 4*out_f).
    out_ref[...] = jnp.concatenate([relu, sig, tnh, smx], axis=-1)


def model_forward(x, weight, bias, *, tile_b=1024):
    """x: (B, 64) f32; weight: (16, 64) f32 (PyTorch layout); bias: (16,) f32.

    Returns (v2, v3, v4, v5, v6), each (B, 16) f32.  v6 aliases v3 (identical values).
    """
    B, in_f = x.shape
    out_f = weight.shape[0]

    w_t = weight.T                  # (in_f, out_f); one-time, folded under jit
    b2 = bias.reshape(1, out_f)     # 2D for clean VMEM layout

    # Batch tile: multiple of 8 sublanes; small B collapses to one 8-row step.
    TILE_B = min(tile_b, max(8, ((B + 7) // 8) * 8))
    n_blocks = pl.cdiv(B, TILE_B)
    B_padded = n_blocks * TILE_B
    if B_padded != B:
        x = jnp.pad(x, ((0, B_padded - B), (0, 0)))

    packed = pl.pallas_call(
        _linear_activations_kernel,
        out_shape=jax.ShapeDtypeStruct((B_padded, 4 * out_f), jnp.float32),
        grid=(n_blocks,),
        in_specs=[
            pl.BlockSpec((TILE_B, in_f), lambda i: (i, 0)),   # x: tiled over batch
            pl.BlockSpec((in_f, out_f), lambda i: (0, 0)),    # W^T: resident
            pl.BlockSpec((1, out_f), lambda i: (0, 0)),       # bias: resident
        ],
        out_specs=pl.BlockSpec((TILE_B, 4 * out_f), lambda i: (i, 0)),
        compiler_params=pltpu.CompilerParams(
            dimension_semantics=("parallel",),
        ),
        cost_estimate=pl.CostEstimate(
            flops=2 * B_padded * in_f * out_f + 16 * B_padded * out_f,
            transcendentals=3 * B_padded * out_f,   # tanh over 2*out_f + exp over out_f
            bytes_accessed=4 * (B_padded * in_f + in_f * out_f + out_f
                                + B_padded * 4 * out_f),
        ),
    )(x, w_t, b2)

    v2 = packed[:B, 0 * out_f:1 * out_f]
    v3 = packed[:B, 1 * out_f:2 * out_f]
    v4 = packed[:B, 2 * out_f:3 * out_f]
    v5 = packed[:B, 3 * out_f:4 * out_f]
    v6 = v3  # same values as torch.sigmoid(v1); duplicate stripe elided for 20% fewer bytes
    return v2, v3, v4, v5, v6


if __name__ == "__main__":
    key = jax.random.PRNGKey(0)
    kx, kw, kb = jax.random.split(key, 3)

    B, IN, OUT = 2, 64, 16
    x1 = jax.random.normal(kx, (B, IN), dtype=jnp.float32)

    # Deterministic parameter init mimicking nn.Linear default (uniform +/- 1/sqrt(IN))
    bound = 1.0 / (IN ** 0.5)
    weight = jax.random.uniform(kw, (OUT, IN), jnp.float32, -bound, bound)
    bias = jax.random.uniform(kb, (OUT,), jnp.float32, -bound, bound)

    outs = model_forward(x1, weight, bias)
    outs = jax.block_until_ready(outs)

    # Pure-JAX reference with matching (HIGHEST) matmul precision.
    v1 = jnp.dot(x1, weight.T, precision=lax.Precision.HIGHEST) + bias
    ref = (
        jnp.maximum(v1, 0.0),
        jax.nn.sigmoid(v1),
        jnp.tanh(v1),
        jax.nn.softmax(v1, axis=-1),
        jax.nn.sigmoid(v1),
    )
    for o, r in zip(outs, ref):
        assert o.shape == r.shape, "shape mismatch vs reference"
        assert jnp.allclose(o, r, atol=1e-5, rtol=1e-5), "mismatch vs reference"

    print("KERNEL_OK")
</pallas_src>

<mosaic_0001>
module attributes {stable_mosaic.version = 11 : i64} {
  func.func @_linear_activations_kernel(%arg0: i32, %arg1: memref<8x64xf32, #tpu.memory_space<vmem>>, %arg2: memref<64x16xf32, #tpu.memory_space<vmem>>, %arg3: memref<1x16xf32, #tpu.memory_space<vmem>>, %arg4: memref<8x64xf32, #tpu.memory_space<vmem>>) attributes {dimension_semantics = [#tpu.dimension_semantics<parallel>], iteration_bounds = array<i64: 1>, scalar_prefetch = 0 : i64, scratch_operands = 0 : i64, tpu.core_type = #tpu.core_type<tc>, window_params = [{transform_indices = @transform_0, window_bounds = array<i64: 8, 64>}, {pipeline_mode = #tpu.pipeline_mode<synchronous>, transform_indices = @transform_1, window_bounds = array<i64: 64, 16>}, {pipeline_mode = #tpu.pipeline_mode<synchronous>, transform_indices = @transform_2, window_bounds = array<i64: 1, 16>}, {transform_indices = @transform_3, window_bounds = array<i64: 8, 64>}]} {
    %c0 = arith.constant 0 : index
    %c0_0 = arith.constant 0 : index
    %0 = vector.load %arg1[%c0, %c0_0] : memref<8x64xf32, #tpu.memory_space<vmem>>, vector<8x64xf32>
    %c0_1 = arith.constant 0 : index
    %c0_2 = arith.constant 0 : index
    %1 = vector.load %arg2[%c0_1, %c0_2] : memref<64x16xf32, #tpu.memory_space<vmem>>, vector<64x16xf32>
    %cst = arith.constant dense<0.000000e+00> : vector<8x16xf32>
    %2 = tpu.matmul %0, %1, %cst {dimension_numbers = #tpu.dot_dimension_numbers<[1], [0], [0], [1], [0, 0, 1, 1], [], []>, precision = #tpu.contract_precision<fp32>} : vector<8x64xf32>, vector<64x16xf32>, vector<8x16xf32> -> vector<8x16xf32>
    %c0_3 = arith.constant 0 : index
    %c0_4 = arith.constant 0 : index
    %3 = vector.load %arg3[%c0_3, %c0_4] : memref<1x16xf32, #tpu.memory_space<vmem>>, vector<1x16xf32>
    %4 = vector.broadcast %3 : vector<1x16xf32> to vector<8x16xf32>
    %5 = arith.addf %2, %4 : vector<8x16xf32>
    %cst_5 = arith.constant 0.000000e+00 : f32
    %6 = vector.broadcast %cst_5 : f32 to vector<8x16xf32>
    %7 = arith.maximumf %5, %6 : vector<8x16xf32>
    %cst_6 = arith.constant 5.000000e-01 : f32
    %8 = vector.broadcast %cst_6 : f32 to vector<8x16xf32>
    %9 = arith.mulf %8, %5 : vector<8x16xf32>
    %10 = tpu.concatenate %9, %5 in 1 : vector<8x16xf32>, vector<8x16xf32> -> vector<8x32xf32>
    %11 = math.tanh %10 : vector<8x32xf32>
    %12 = vector.extract_strided_slice %11 {offsets = [0, 0], sizes = [8, 16], strides = [1, 1]} : vector<8x32xf32> to vector<8x16xf32>
    %cst_7 = arith.constant 1.000000e+00 : f32
    %13 = vector.broadcast %cst_7 : f32 to vector<8x16xf32>
    %14 = arith.addf %12, %13 : vector<8x16xf32>
    %cst_8 = arith.constant 5.000000e-01 : f32
    %15 = vector.broadcast %cst_8 : f32 to vector<8x16xf32>
    %16 = arith.mulf %15, %14 : vector<8x16xf32>
    %17 = vector.extract_strided_slice %11 {offsets = [0, 16], sizes = [8, 16], strides = [1, 1]} : vector<8x32xf32> to vector<8x16xf32>
    %cst_9 = arith.constant dense<0xFF800000> : vector<8xf32>
    %18 = vector.multi_reduction <maximumf>, %5, %cst_9 [1] : vector<8x16xf32> to vector<8xf32>
    %19 = vector.shape_cast %18 : vector<8xf32> to vector<8x1xf32>
    %20 = vector.broadcast %19 : vector<8x1xf32> to vector<8x16xf32>
    %21 = arith.subf %5, %20 : vector<8x16xf32>
    %22 = math.exp %21 : vector<8x16xf32>
    %cst_10 = arith.constant dense<0.000000e+00> : vector<8xf32>
    %23 = vector.multi_reduction <add>, %22, %cst_10 [1] : vector<8x16xf32> to vector<8xf32>
    %24 = vector.shape_cast %23 : vector<8xf32> to vector<8x1xf32>
    %25 = vector.broadcast %24 : vector<8x1xf32> to vector<8x16xf32>
    %26 = arith.divf %22, %25 : vector<8x16xf32>
    %27 = tpu.concatenate %7, %16, %17, %26 in 1 : vector<8x16xf32>, vector<8x16xf32>, vector<8x16xf32>, vector<8x16xf32> -> vector<8x64xf32>
    %c0_11 = arith.constant 0 : index
    %c0_12 = arith.constant 0 : index
    %28 = vector.load %arg4[%c0_11, %c0_12] : memref<8x64xf32, #tpu.memory_space<vmem>>, vector<8x64xf32>
    tpu.vector_store %arg4[%c0_11, %c0_12], %27 {strides = array<i32>} : memref<8x64xf32, #tpu.memory_space<vmem>>, vector<8x64xf32>,
    return
  }
  func.func @transform_0(%arg0: i32) -> (i32, i32) {
    %c0_i32 = arith.constant 0 : i32
    %c0_i32_0 = arith.constant 0 : i32
    return %arg0, %c0_i32 : i32, i32
  }
  func.func @transform_1(%arg0: i32) -> (i32, i32) {
    %c0_i32 = arith.constant 0 : i32
    %c0_i32_0 = arith.constant 0 : i32
    %c0_i32_1 = arith.constant 0 : i32
    return %c0_i32, %c0_i32_0 : i32, i32
  }
  func.func @transform_2(%arg0: i32) -> (i32, i32) {
    %c0_i32 = arith.constant 0 : i32
    %c0_i32_0 = arith.constant 0 : i32
    %c0_i32_1 = arith.constant 0 : i32
    return %c0_i32, %c0_i32_0 : i32, i32
  }
  func.func @transform_3(%arg0: i32) -> (i32, i32) {
    %c0_i32 = arith.constant 0 : i32
    %c0_i32_0 = arith.constant 0 : i32
    return %arg0, %c0_i32 : i32, i32
  }
}

</mosaic_0001>

<bundles_post_ra>
// kernel: tpu_custom_call.1
= control target key start
LH: loop header
LB: loop body
LE: loop exit
PB: predicated region body
PF: predicated region fallthrough
CT: control target
= control target key end

     0   :  { %s523_s0 = inlined_call_operand.vmem [shape: f32[8,64], index: 0, kind: input, shape index: {}]   ;;  %s524_s1 = inlined_call_operand.vmem [shape: f32[64,16], index: 1, kind: input, shape index: {}]   ;;  %s525_s2 = inlined_call_operand.vmem [shape: f32[1,16], index: 2, kind: input, shape index: {}]   ;;  %s526_s3 = inlined_call_operand.hbm [shape: f32[8,64], index: 3, kind: output, shape index: {}]  }
   0x1   :  { %v23_v0 = vld [vmem:[%s524_s1 + $0x38] sm:$0xff]  ;;  %v22_v1 = vld [vmem:[%s524_s1 + $0x30] sm:$0xff]  ;;  %v21_v2 = vld [vmem:[%s524_s1 + $0x28] sm:$0xff] }
   0x2   :  { %v406_v3 = vand.u32 4294901760, %v23_v0  ;;  %v408_v4 = vand.u32 4294901760, %v22_v1  ;;  %v410_v5 = vand.u32 4294901760, %v21_v2  ;;  %v20_v6 = vld [vmem:[%s524_s1 + $0x20] sm:$0xff]  ;;  %v19_v7 = vld [vmem:[%s524_s1 + $0x18] sm:$0xff]  ;;  %v18_v8 = vld [vmem:[%s524_s1 + $0x10] sm:$0xff] }
   0x3   :  { %v421_v9 = vand.u32 4294901760, %v20_v6  ;;  %v423_v10 = vand.u32 4294901760, %v19_v7  ;;  %v425_v11 = vand.u32 4294901760, %v18_v8  ;;  %v17_v12 = vld [vmem:[%s524_s1 + $0x8] sm:$0xff]  ;;  %v16_v13 = vld [vmem:[%s524_s1] sm:$0xff] }
   0x4   :  { %41 = vmatpush.msra.mxu0 %v406_v3  ;;  %v435_v14 = vsub.f32 %v23_v0, %v406_v3  ;;  %v438_v15 = vsub.f32 %v22_v1, %v408_v4  ;;  %v441_v16 = vsub.f32 %v21_v2, %v410_v5  ;;  %173 = vmatpush.msra.mxu3 %v406_v3  ;;  %v444_v17 = vand.u32 4294901760, %v17_v12 }
   0x5   :  { %8 = vsyncpa [#allocation3], 0  ;;  %v447_v18 = vsub.f32 %v20_v6, %v421_v9  ;;  %v450_v19 = vsub.f32 %v19_v7, %v423_v10  ;;  %v453_v20 = vsub.f32 %v18_v8, %v425_v11  ;;  %v460_v24 = vand.u32 4294901760, %v16_v13  ;;  %v15_v32 = vld [vmem:[%s523_s0] sm:$0xff]  ;;  %s374_s30 = smov 16   ;;  %s376_s4 = smov [#allocation2]  }
   0x6   :  { %43 = vmatpush.msra.mxu0 %v408_v4  ;;  %v75_v21 = vand.u32 4294901760, %v435_v14  ;;  %v81_v22 = vand.u32 4294901760, %v438_v15  ;;  %136 = vmatpush.msra.mxu2 %v435_v14  ;;  %v87_v23 = vand.u32 4294901760, %v441_v16  ;;  %v465_v26 = vsub.f32 %v17_v12, %v444_v17  ;;  %v341_v55 = vld [vmem:[%s525_s2] ss:$0 sm:$0xff]  ;;  %s375_s2 = smov 48  }
   0x7   :  { %v93_v25 = vand.u32 4294901760, %v447_v18  ;;  %175 = vmatpush.msra.mxu3 %v408_v4  ;;  %v99_v30 = vand.u32 4294901760, %v450_v19  ;;  %v105_v31 = vand.u32 4294901760, %v453_v20  ;;  %vm28_vm0 = vcmask 523264   ;;  %s327_s5 = sshll.u32 %s376_s4, 4  ;;  %s329_s8 = sshll.u32 %s526_s3, 4  ;;  %s328_s5 = int_to_ptr.vmem [resolvable:$true] %s327_s5  ;;  %s330_s8 = int_to_ptr.hbm [resolvable:$true] %s329_s8 }
   0x8   :  { %v76_v27 = vsub.f32 %v435_v14, %v75_v21  ;;  %45 = vmatpush.msra.mxu0 %v410_v5  ;;  %v82_v28 = vsub.f32 %v438_v15, %v81_v22  ;;  %v88_v29 = vsub.f32 %v441_v16, %v87_v23  ;;  %139 = vmatpush.msra.mxu2 %v438_v15  ;;  %v111_v39 = vand.u32 4294901760, %v465_v26 }
   0x9   :  { %177 = vmatpush.msra.mxu3 %v410_v5  ;;  %v94_v35 = vsub.f32 %v447_v18, %v93_v25  ;;  %v116_v36 = vsub.f32 %v16_v13, %v460_v24  ;;  %v100_v38 = vsub.f32 %v450_v19, %v99_v30  ;;  %v30_v40 = vsel %vm28_vm0, %v15_v32, 0 }
   0xa   :  { %v77_v33 = vand.u32 4294901760, %v76_v27  ;;  %v83_v34 = vand.u32 4294901760, %v82_v28  ;;  %47 = vmatpush.msra.mxu0 %v421_v9  ;;  %142 = vmatpush.msra.mxu2 %v441_v16  ;;  %v89_v37 = vand.u32 4294901760, %v88_v29  ;;  %v56_v41 = vand.u32 4294901760, %v30_v40 }
   0xb   :  { %179 = vmatpush.msra.mxu3 %v421_v9  ;;  %v95_v42 = vand.u32 4294901760, %v94_v35  ;;  %v106_v43 = vsub.f32 %v453_v20, %v105_v31  ;;  %v117_v44 = vand.u32 4294901760, %v116_v36  ;;  %v101_v46 = vand.u32 4294901760, %v100_v38 }
   0xc   :  { %78 = vmatpush.msra.mxu1 %v77_v33  ;;  %49 = vmatpush.msra.mxu0 %v423_v10  ;;  %v57_v45 = vsub.f32 %v30_v40, %v56_v41  ;;  %v112_v47 = vsub.f32 %v465_v26, %v111_v39  ;;  %vm275_vm1 = vcmask 130048   ;;  %vm317_vm6 = vcmask 261120  }
   0xd   :  { %145 = vmatpush.msra.mxu2 %v447_v18  ;;  %181 = vmatpush.msra.mxu3 %v423_v10  ;;  %v107_v49 = vand.u32 4294901760, %v106_v43  ;;  %v118_v50 = vsub.f32 %v116_v36, %v117_v44  ;;  %vm319_vm7 = vcmask 392192  }
   0xe   :  { %84 = vmatpush.msra.mxu1 %v83_v34  ;;  %51 = vmatpush.msra.mxu0 %v425_v11  ;;  %v58_v48 = vand.u32 4294901760, %v57_v45  ;;  %v113_v52 = vand.u32 4294901760, %v112_v47 }
   0xf   :  { %148 = vmatpush.msra.mxu2 %v450_v19  ;;  %183 = vmatpush.msra.mxu3 %v425_v11  ;;  %v119_v54 = vand.u32 4294901760, %v118_v50 }
  0x10   :  { %90 = vmatpush.msra.mxu1 %v89_v37  ;;  %53 = vmatpush.msra.mxu0 %v444_v17  ;;  %v59_v51 = vsub.f32 %v57_v45, %v58_v48 }
  0x11   :  { %151 = vmatpush.msra.mxu2 %v453_v20  ;;  %185 = vmatpush.msra.mxu3 %v444_v17 }
  0x12   :  { %96 = vmatpush.msra.mxu1 %v95_v42  ;;  %55 = vmatpush.msra.mxu0 %v460_v24  ;;  %v60_v53 = vand.u32 4294901760, %v59_v51 }
  0x13   :  { %154 = vmatpush.msra.mxu2 %v465_v26  ;;  %187 = vmatpush.msra.mxu3 %v460_v24 }
  0x14   :  { %206 = vmatpush.msrb.mxu0 %v75_v21  ;;  %102 = vmatpush.msra.mxu1 %v101_v46 }
  0x15   :  { %157 = vmatpush.msra.mxu2 %v116_v36  ;;  %191 = vmatmul.f32.vlgmr.msra.gmra.mxu3 %v58_v48 }
  0x16   :  { %210 = vmatpush.msrb.mxu0 %v81_v22  ;;  %108 = vmatpush.msra.mxu1 %v107_v49 }
  0x17   :  { %160 = vmatmul.f32.vlgmr.msra.gmra.mxu2 %v57_v45  ;;  %61 = vmatmul.f32.vlgmr.msra.gmra.mxu0 %v60_v53 }
  0x18   :  { %214 = vmatpush.msrb.mxu0 %v87_v23  ;;  %114 = vmatpush.msra.mxu1 %v113_v52 }
  0x1a   :  { %218 = vmatpush.msrb.mxu0 %v93_v25  ;;  %120 = vmatpush.msra.mxu1 %v119_v54 }
  0x1b   :  { %122 = vmatmul.f32.vlgmr.msra.gmra.mxu1 %v56_v41 }
  0x1c   :  { %249 = vmatpush.msrb.mxu1 %v406_v3  ;;  %222 = vmatpush.msrb.mxu0 %v99_v30 }
  0x1e   :  { %251 = vmatpush.msrb.mxu1 %v408_v4  ;;  %226 = vmatpush.msrb.mxu0 %v105_v31 }
  0x20   :  { %253 = vmatpush.msrb.mxu1 %v410_v5  ;;  %230 = vmatpush.msrb.mxu0 %v111_v39 }
  0x22   :  { %255 = vmatpush.msrb.mxu1 %v421_v9  ;;  %234 = vmatpush.msrb.mxu0 %v117_v44 }
  0x23   :  { %236 = vmatmul.f32.vlgmr.msrb.gmra.mxu0 %v56_v41 }
  0x24   :  { %257 = vmatpush.msrb.mxu1 %v423_v10 }
  0x26   :  { %259 = vmatpush.msrb.mxu1 %v425_v11 }
  0x28   :  { %261 = vmatpush.msrb.mxu1 %v444_v17 }
  0x2a   :  { %263 = vmatpush.msrb.mxu1 %v460_v24 }
  0x2b   :  { %265 = vmatmul.f32.vlgmr.msrb.gmra.mxu1 %v56_v41 }
  0x94   :  { %v62_v56 = vpop.f32.mrf.mxu0 }
  0x95   :  { %v63_v57 = vadd.f32 %v341_v55, %v62_v56 }
  0x98   :  { %v123_v58 = vpop.f32.mrf.mxu1  ;;  %v192_v62 = vpop.f32.mrf.mxu3 }
  0x99   :  { %v124_v60 = vadd.f32 %v123_v58, %v63_v57 }
  0x9a   :  { %v161_v59 = vpop.f32.mrf.mxu2 }
  0x9b   :  { %v162_v61 = vadd.f32 %v161_v59, %v124_v60 }
  0x9d   :  { %v193_v63 = vadd.f32 %v192_v62, %v162_v61 }
  0xa0   :  { %v237_v0 = vpop.f32.mrf.mxu0 }
  0xa1   :  { %v238_v1 = vadd.f32 %v237_v0, %v193_v63 }
  0xa8   :  { %v266_v2 = vpop.f32.mrf.mxu1 }
  0xa9   :  { %v267_v3 = vadd.f32 %v266_v2, %v238_v1 }
  0xab   :  { %272 = vrot.lane.b32.xlu1 %v267_v3, %s374_s30  ;;  %v280_v4 = vsel %vm275_vm1, %v267_v3, -inf  ;;  %v270_v5 = vmul.f32 0.5, %v267_v3  ;;  %v269_v30 = vmax.f32 %v267_v3, 0.0 }
  0xac   :  { %281 = vmax.xlane.f32.xlu0 %v280_v4 }
 0x11d   :  { %v273_v6 = vpop.permute.xlu1 %272 }
 0x11e   :  { %v276_v7 = vsel %vm275_vm1, %v270_v5, %v273_v6 }
 0x11f   :  { %342 = vtanh.f32 %v276_v7  ;;  %v282_v8 = vpop.xlane.xlu0 %281 }
 0x120   :  { %v283_v9 = vsub.f32 %v267_v3, %v282_v8 }
 0x122   :  { %v284_v10 = vmul.f32 1.442695, %v283_v9 }
 0x124   :  { %344 = vpow2.f32 %v284_v10 }
 0x125   :  { %v343_v11 = vpop.eup %342 }
 0x126   :  { %309 = vrot.lane.b32.xlu2 %v343_v11, %s374_s30  ;;  %v278_v12 = vadd.f32 1.0, %v343_v11 }
 0x128   :  { %v279_v13 = vmul.f32 0.5, %v278_v12 }
 0x12a   :  { %v345_v14 = vpop.eup %344  ;;  %305 = vrot.lane.b32.xlu1 %v279_v13, %s374_s30 }
 0x12b   :  { %v286_v15 = vsel %vm275_vm1, %v345_v14, 0.0 }
 0x12c   :  { %287 = vadd.xlane.f32.xlu0 %v286_v15 }
 0x180   :  { %v310_v28 = vpop.permute.xlu2 %309 }
 0x19c   :  { %v306_v29 = vpop.permute.xlu1 %305 }
 0x19d   :  { %v316_v31 = vsel %vm275_vm1, %v269_v30, %v306_v29 }
 0x19e   :  { %v318_v33 = vsel %vm317_vm6, %v316_v31, %v310_v28 }
 0x19f   :  { %v288_v16 = vpop.xlane.xlu0 %287 }
 0x1a0   :  { %346 = vrcp.f32 %v288_v16  ;;  %v300_v20 = vand.u32 2147483648, %v288_v16  ;;  %v298_v22 = vand.u32 2147483647, %v288_v16  ;;  %vm294_vm3 = vweird.f32 %v288_v16 }
 0x1a2   :  { %v301_v24 = vor.u32 1.1754944e-38, %v300_v20  ;;  %vm299_vm5 = vcmp.eq.f32.partialorder %v298_v22, 8.507059e+37 }
 0x1a6   :  { %v347_v17 = vpop.eup %346 }
 0x1a7   :  { %v290_v18 = vmul.f32 %v347_v17, %v288_v16  ;;  %vm295_vm2 = vweird.f32 %v347_v17 }
 0x1a8   :  { %vm296_vm4 = vmor %vm294_vm3, %vm295_vm2 }
 0x1a9   :  { %v291_v19 = vsub.f32 1.0, %v290_v18 }
 0x1ab   :  { %v292_v21 = vmul.f32 %v347_v17, %v291_v19 }
 0x1ad   :  { %v293_v23 = vadd.f32 %v347_v17, %v292_v21 }
 0x1af   :  { %v297_v25 = vsel %vm296_vm4, %v347_v17, %v293_v23 }
 0x1b0   :  { %v302_v26 = vsel %vm299_vm5, %v301_v24, %v297_v25 }
 0x1b1   :  { %v303_v27 = vmul.f32 %v345_v14, %v302_v26 }
 0x1b3   :  { %313 = vrot.lane.b32.xlu2 %v303_v27, %s375_s2 }
 0x20d   :  { %v314_v32 = vpop.permute.xlu2 %313 }
 0x20e   :  { %v320_v34 = vsel %vm319_vm7, %v318_v33, %v314_v32 }
 0x20f   :  { %321 = vst.msk [vmem:[#allocation2] sm:$0xff] %vm28_vm0, %v320_v34 }
 0x210   :  { %332 = dma.vmem_to_hbm [thread:$0]  %s328_s5, 128, %s330_s8, [#allocation3]  }
 0x211   :  { %372 = dma.done.wait [#allocation3], 128  }
 0x212   :  { %373 = vsyncadd [#allocation3], 4294967168 }
 0x213   :  { %337 = vsyncpa [#allocation3], 1 }

</bundles_post_ra>
